<compile_context>
chip_gen: v6e
topology: v6e:2x2x1
jax: 0.10.0
libtpu: 0.0.40
codegen_flags: <defaults>
</compile_context>

<pallas_src>
import jax
import jax.numpy as jnp
from jax.experimental import pallas as pl
from jax.experimental.pallas import tpu as pltpu


_LANES = 128
_TARGET_BLOCK_BYTES = 2 * 1024 * 1024  # ~2 MiB per block (safe on v5e/v6e/v7x)


def _ptlu_kernel(t_ref, x_ref, o_ref):
    # PTLU == hardtanh(x, -T, T): pure VPU elementwise clamp.
    x = x_ref[...]
    t = t_ref[0].astype(x.dtype)
    o_ref[...] = jnp.minimum(jnp.maximum(x, -t), t)


def _sublanes(dtype) -> int:
    # Sublane packing: 8 for 4-byte, 16 for 2-byte, 32 for 1-byte dtypes.
    return max(8, 32 // jnp.dtype(dtype).itemsize)


def ptlu(x, T=7.0, *, block_bytes=_TARGET_BLOCK_BYTES):
    """Apply PTLU / F.hardtanh(x, -T, T) elementwise via a Pallas TPU kernel.

    Accepts any shape (e.g. NCHW). Returns same shape & dtype.
    """
    orig_shape = x.shape
    dtype = x.dtype
    n = x.size
    if n == 0:
        return x

    itemsize = jnp.dtype(dtype).itemsize
    sub = _sublanes(dtype)
    t_arr = jnp.full((1,), T, dtype=jnp.float32)  # SMEM scalar; no recompile per T

    # ---- lane-dense 2-D view ------------------------------------------------
    # Fast path: pick the widest lane width (multiple of 128) that divides n;
    # then the reshape is a free contiguous view (no pad, no trailing slice).
    lanes = 0
    for cand in (1024, 512, 256, _LANES):
        if n % cand == 0:
            lanes = cand
            break
    if lanes:
        x2d = x.reshape(n // lanes, lanes)
        ragged = False
    else:
        # Ragged tail: pad the flat vector up to a multiple of 128 lanes.
        lanes = _LANES
        n_pad = pl.cdiv(n, lanes) * lanes
        x2d = jnp.pad(jnp.ravel(x), (0, n_pad - n)).reshape(n_pad // lanes, lanes)
        ragged = True

    rows = x2d.shape[0]

    # ---- row tile -----------------------------------------------------------
    rows_per_block = max(sub, (block_bytes // (lanes * itemsize)) // sub * sub)
    if rows > rows_per_block:
        tile_r = rows_per_block                      # big streaming blocks
    elif rows >= 2 * sub:
        # Fits one block but can still be split in two (sublane-aligned) so the
        # grid shards across both TensorCores on v7x.
        tile_r = pl.cdiv((rows + 1) // 2, sub) * sub
    else:
        tile_r = rows                                # full extent (tiny input)

    grid = (pl.cdiv(rows, tile_r),)                  # partial last block is masked

    out2d = pl.pallas_call(
        _ptlu_kernel,
        out_shape=jax.ShapeDtypeStruct((rows, lanes), dtype),
        grid_spec=pltpu.PrefetchScalarGridSpec(
            num_scalar_prefetch=0,
            grid=grid,
            in_specs=[
                pl.BlockSpec(memory_space=pltpu.MemorySpace.SMEM),   # T scalar
                pl.BlockSpec((tile_r, lanes), lambda i: (i, 0)),     # x tile
            ],
            out_specs=pl.BlockSpec((tile_r, lanes), lambda i: (i, 0)),
        ),
        compiler_params=pltpu.CompilerParams(
            dimension_semantics=("parallel",),
        ),
        # Reuse the input HBM buffer for the output when it is dead after this
        # call (XLA inserts a copy otherwise, so this is always correct).
        input_output_aliases={1: 0},
    )(t_arr, x2d)

    if ragged:
        return out2d.reshape(-1)[:n].reshape(orig_shape)
    return out2d.reshape(orig_shape)


if __name__ == "__main__":
    key = jax.random.PRNGKey(0)
    # Small NCHW activation consistent with the conv-net module.
    x = jax.random.normal(key, (2, 4, 16, 16), dtype=jnp.float32) * 10.0

    T = 7.0
    ref = jnp.clip(x, -T, T)  # pure-JAX reference

    out = ptlu(x, T=T)
    out = jax.block_until_ready(out)

    assert out.shape == x.shape
    assert out.dtype == x.dtype
    assert jnp.allclose(out, ref), "mismatch vs reference hardtanh (fast path)"

    # Also exercise the ragged (n % 128 != 0) pad/slice path.
    x2 = jax.random.normal(jax.random.PRNGKey(1), (3, 5, 7), dtype=jnp.float32) * 10.0
    out2 = jax.block_until_ready(ptlu(x2, T=T))
    assert out2.shape == x2.shape
    assert jnp.allclose(out2, jnp.clip(x2, -T, T)), "mismatch vs reference (ragged path)"

    print("KERNEL_OK")
</pallas_src>

<mosaic_0001>
module attributes {stable_mosaic.version = 11 : i64} {
  func.func @_ptlu_kernel(%arg0: i32, %arg1: memref<1xf32, #tpu.memory_space<smem>>, %arg2: memref<2x1024xf32, #tpu.memory_space<vmem>>, %arg3: memref<2x1024xf32, #tpu.memory_space<vmem>>) attributes {dimension_semantics = [#tpu.dimension_semantics<parallel>], iteration_bounds = array<i64: 1>, scalar_prefetch = 0 : i64, scratch_operands = 0 : i64, tpu.core_type = #tpu.core_type<tc>, window_params = [{transform_indices = @transform_0, window_bounds = array<i64: 1>}, {transform_indices = @transform_1, window_bounds = array<i64: 2, 1024>}, {transform_indices = @transform_2, window_bounds = array<i64: 2, 1024>}]} {
    %c0 = arith.constant 0 : index
    %c0_0 = arith.constant 0 : index
    %0 = vector.load %arg2[%c0, %c0_0] : memref<2x1024xf32, #tpu.memory_space<vmem>>, vector<2x1024xf32>
    %c0_1 = arith.constant 0 : index
    %1 = memref.load %arg1[%c0_1] : memref<1xf32, #tpu.memory_space<smem>>
    %cst = arith.constant 0.000000e+00 : f32
    %2 = arith.subf %cst, %1 : f32
    %3 = vector.broadcast %2 : f32 to vector<2x1024xf32>
    %4 = arith.maximumf %0, %3 : vector<2x1024xf32>
    %5 = vector.broadcast %1 : f32 to vector<2x1024xf32>
    %6 = arith.minimumf %4, %5 : vector<2x1024xf32>
    %c0_2 = arith.constant 0 : index
    %c0_3 = arith.constant 0 : index
    %7 = vector.load %arg3[%c0_2, %c0_3] : memref<2x1024xf32, #tpu.memory_space<vmem>>, vector<2x1024xf32>
    tpu.vector_store %arg3[%c0_2, %c0_3], %6 {strides = array<i32>} : memref<2x1024xf32, #tpu.memory_space<vmem>>, vector<2x1024xf32>,
    return
  }
  func.func @transform_0(%arg0: i32) -> i32 {
    %c0_i32 = arith.constant 0 : i32
    %c0_i32_0 = arith.constant 0 : i32
    return %c0_i32 : i32
  }
  func.func @transform_1(%arg0: i32) -> (i32, i32) {
    %c0_i32 = arith.constant 0 : i32
    %c0_i32_0 = arith.constant 0 : i32
    return %arg0, %c0_i32 : i32, i32
  }
  func.func @transform_2(%arg0: i32) -> (i32, i32) {
    %c0_i32 = arith.constant 0 : i32
    %c0_i32_0 = arith.constant 0 : i32
    return %arg0, %c0_i32 : i32, i32
  }
}

</mosaic_0001>

<bundles_post_ra>
// kernel: tpu_custom_call.1
= control target key start
LH: loop header
LB: loop body
LE: loop exit
PB: predicated region body
PF: predicated region fallthrough
CT: control target
= control target key end

     0   :  { %8 = vsyncpa [#allocation4], 0  ;;  %s127_s0 = inlined_call_operand.<no memory space> [shape: f32[1], index: 0, kind: input, shape index: {}]   ;;  %s128_s1 = inlined_call_operand.hbm [shape: f32[2,1024], index: 1, kind: input, shape index: {}, may-alias: {1,2}]   ;;  %s129_s2 = inlined_call_operand.hbm [shape: f32[2,1024], index: 2, kind: output, shape index: {}, may-alias: {1,2}]  }
   0x1   :  { %9 = vsyncpa [#allocation5], 0  ;;  %s98_s9 = smov [#allocation3]  }
   0x2   :  { %s18_s10 = sshll.u32 %s98_s9, 4  ;;  %s19_s10 = int_to_ptr.vmem [resolvable:$true] %s18_s10 }
   0x3   :  { %s62_s11 = scalar_lea.vmem %s19_s10, 256  ;;  %p67_p1 = scmp.lt.s32.totalorder %s19_s10, %s19_s10 }
   0x4   :  { %p63_p0 = scmp.ne.s32.totalorder %s19_s10, %s62_s11  ;;  %p68_p2 = scmp.lt.s32.totalorder %s62_s11, %s62_s11 }
   0x6   :  { %p69_p3 = por %p68_p2, %p67_p1 }
   0x8   :  { %p70_p4 = pnand %p69_p3, %p63_p0 }
   0xa   :  { %73 = shalt.err (!%p70_p4)
}
   0xb   :  { %21 = dma.hbm_to_vmem [thread:$0]  %s128_s1, 256, %s19_s10, [#allocation4]  }
   0xc   :  { %94 = dma.done.wait [#allocation4], 256  }
   0xd   :  { %95 = vsyncadd [#allocation4], 4294967040  ;;  %s28_s16 = ssub.f32 0.0, %s127_s0  ;;  %v25_v1 = vld [vmem:[#allocation3] sm:$0xff]  ;;  %v32_v2 = vstv %s127_s0  ;;  %v26_v3 = vld [vmem:[#allocation3 + $0x8] sm:$0xff]  ;;  %s99_s19 = smov [#allocation6]  }
   0xe   :  { %s43_s20 = sshll.u32 %s99_s19, 4  ;;  %s44_s20 = int_to_ptr.vmem [resolvable:$true] %s43_s20 }
   0xf   :  { %v29_v0 = vstv %s28_s16  ;;  %s74_s1 = scalar_lea.vmem %s44_s20, 256  ;;  %p79_p6 = scmp.lt.s32.totalorder %s44_s20, %s44_s20 }
  0x10   :  { %v30_v4 = vmax.f32 %v25_v1, %v29_v0  ;;  %v31_v5 = vmax.f32 %v26_v3, %v29_v0  ;;  %p75_p5 = scmp.ne.s32.totalorder %s44_s20, %s74_s1  ;;  %p80_p7 = scmp.lt.s32.totalorder %s74_s1, %s74_s1 }
  0x12   :  { %v33_v6 = vmin.f32 %v30_v4, %v32_v2  ;;  %v34_v7 = vmin.f32 %v31_v5, %v32_v2  ;;  %p81_p8 = por %p80_p7, %p79_p6 }
  0x14   :  { %35 = vst [vmem:[#allocation6] sm:$0xff] %v33_v6  ;;  %36 = vst [vmem:[#allocation6 + $0x8] sm:$0xff] %v34_v7  ;;  %p82_p9 = pnand %p81_p8, %p75_p5 }
  0x16   :  { %85 = shalt.err (!%p82_p9)
}
  0x17   :  { %46 = dma.vmem_to_hbm [thread:$0]  %s44_s20, 256, %s129_s2, [#allocation5]  }
  0x18   :  { %96 = dma.done.wait [#allocation5], 256  }
  0x19   :  { %97 = vsyncadd [#allocation5], 4294967040 }
  0x1a   :  { %50 = vsyncpa [#allocation4], 1 }
  0x1b   :  { %51 = vsyncpa [#allocation5], 1 }

</bundles_post_ra>
